<compile_context>
chip_gen: v7x
topology: tpu7x:2x2x1
jax: 0.10.0
libtpu: 0.0.40
codegen_flags: <defaults>
</compile_context>

<pallas_src>
import jax
import jax.numpy as jnp
from jax.experimental import pallas as pl
from jax.experimental.pallas import tpu as pltpu

LANE = 128
SUBLANE = 8


def _round_up(n, m):
    return ((n + m - 1) // m) * m


def _vmem_capacity_bytes():
    # Generation-aware VMEM size (v5e/v6e: 128 MiB, v7x: 64 MiB per TC).
    try:
        return int(pltpu.get_tpu_info().vmem_capacity_bytes)
    except Exception:
        return 64 << 20  # conservative fallback (v7x per-TC size)


def mlp_classifier_kernel(x_ref, w1_ref, b1_ref, w2_ref, b2_ref,
                          w3_ref, b3_ref, o_ref):
    # x_ref: (TM, IN) f32 or bf16; w* bf16; b* f32 (1, dim); o_ref: (TM, C_P) f32.
    x = x_ref[...].astype(jnp.bfloat16)

    # Layer 1: bf16 MXU matmul with f32 accumulation; bias + LeakyReLU(0.01).
    # The bf16 downcast is fused into the epilogue so the materialized
    # (TM, H1) intermediate is bf16.
    h1 = jnp.dot(x, w1_ref[...], preferred_element_type=jnp.float32) + b1_ref[...]
    h1 = jnp.where(h1 > 0, h1, 0.01 * h1).astype(jnp.bfloat16)

    # Layer 2 — NO activation (LeakyReLU was passed as the bias flag in the
    # original PyTorch module, so it never runs between layers 2 and 3).
    h2 = (jnp.dot(h1, w2_ref[...], preferred_element_type=jnp.float32)
          + b2_ref[...]).astype(jnp.bfloat16)

    # Layer 3.
    logits = (jnp.dot(h2, w3_ref[...], preferred_element_type=jnp.float32)
              + b3_ref[...])

    # Softmax over classes; padded class columns carry a -1e30 bias -> exp == 0.
    m = jnp.max(logits, axis=1, keepdims=True)
    e = jnp.exp(logits - m)
    o_ref[...] = e / jnp.sum(e, axis=1, keepdims=True)


def _choose_tiling(batch, row_bytes, tile_budget):
    """Pick (tm, batch_p): tm a multiple of 8 that fits the per-tile VMEM
    budget, gives >= 2 grid steps whenever the batch allows it (keeps both
    v7x TensorCores busy; a no-op on v5e/v6e), and keeps padded-row waste
    under ~12%."""
    batch_su = _round_up(max(batch, 1), SUBLANE)
    tm_cap = (tile_budget // max(row_bytes, 1)) // SUBLANE * SUBLANE
    tm_cap = max(SUBLANE, min(2048, tm_cap))
    min_steps = 2 if batch_su >= 2 * SUBLANE else 1
    n = min_steps
    while True:
        tm = _round_up(pl.cdiv(batch_su, n), SUBLANE)
        waste = n * tm - batch
        if tm <= tm_cap and (waste <= max(batch // 8, SUBLANE) or tm == SUBLANE):
            return tm, n * tm
        if tm <= SUBLANE:
            return SUBLANE, n * SUBLANE
        n += 1


def mlp_classifier(x, params):
    w1, b1, w2, b2, w3, b3 = params
    batch, in_feats = x.shape
    h1_dim, h2_dim = w1.shape[1], w2.shape[1]
    classes = w3.shape[1]

    # Lane-pad the matmul N dims (hidden / class) to multiples of 128 so the
    # intermediates and output stores are lane-dense.  The layer-1 contraction
    # dim (in_feats) is left unpadded: full-extent blocks are legal and this
    # avoids an extra wrapper-side HBM pass over the activation tensor.
    h1_p = _round_up(h1_dim, LANE)
    h2_p = _round_up(h2_dim, LANE)
    c_p = _round_up(classes, LANE)

    vmem_cap = _vmem_capacity_bytes()
    usable_vmem = max(vmem_cap - (16 << 20), vmem_cap // 2)

    # Resident operands (weights + biases), single-buffered via pl.Buffered(1).
    resident_bytes = ((in_feats * h1_p + h1_p * h2_p + h2_p * c_p) * 2
                      + (h1_p + h2_p + c_p) * 4)
    # TODO(synk): if resident_bytes exceeds ~40% of usable_vmem (very wide
    # layers, esp. on v7x's 64 MiB VMEM), add a K-reduction grid axis
    # ("arbitrary", last) with a VMEM f32 accumulator instead of keeping
    # W1/W2/W3 fully resident.

    # Per-row VMEM cost of one batch tile: double-buffered x/out streams plus
    # the bf16+f32 intermediates (h1, h2, logits, exp).
    row_bytes = (2 * in_feats * 4 + 2 * c_p * 4
                 + (h1_p + h2_p) * 6 + c_p * 8)
    tile_budget = max(usable_vmem - resident_bytes - (2 << 20),
                      SUBLANE * row_bytes)
    tm, batch_p = _choose_tiling(batch, row_bytes, tile_budget)

    def pad2(a, rows, cols, fill=0.0):
        r, c = a.shape
        return jnp.pad(a, ((0, rows - r), (0, cols - c)), constant_values=fill)

    # bf16 matmul operands, f32 biases; padded class columns get a -1e30 bias.
    w1_p = pad2(w1, in_feats, h1_p).astype(jnp.bfloat16)
    w2_p = pad2(w2, h1_p, h2_p).astype(jnp.bfloat16)
    w3_p = pad2(w3, h2_p, c_p).astype(jnp.bfloat16)
    b1_p = pad2(b1, 1, h1_p).astype(jnp.float32)
    b2_p = pad2(b2, 1, h2_p).astype(jnp.float32)
    b3_p = pad2(b3, 1, c_p, fill=-1e30).astype(jnp.float32)

    if batch_p != batch:
        # Row padding needed: fuse pad + f32->bf16 cast in one wrapper pass.
        x_in = pad2(x, batch_p, in_feats).astype(jnp.bfloat16)
    else:
        # No wrapper pass over x at all; the kernel casts on the fly.
        x_in = x

    grid = (batch_p // tm,)

    flops = 2 * batch_p * (in_feats * h1_p + h1_p * h2_p + h2_p * c_p)
    bytes_accessed = (int(x_in.size) * x_in.dtype.itemsize
                      + (w1_p.size + w2_p.size + w3_p.size) * 2
                      + (b1_p.size + b2_p.size + b3_p.size) * 4
                      + batch_p * c_p * 4)
    cost = pl.CostEstimate(flops=flops, transcendentals=batch_p * c_p,
                           bytes_accessed=int(bytes_accessed))

    def build(single_buffer_resident):
        if single_buffer_resident:
            resident = lambda shape: pl.BlockSpec(
                shape, lambda i: (0, 0), pipeline_mode=pl.Buffered(1))
            res_factor = 1
        else:
            resident = lambda shape: pl.BlockSpec(shape, lambda i: (0, 0))
            res_factor = 2
        need = res_factor * resident_bytes + tm * row_bytes
        vmem_limit = int(min(max(int(need * 1.5) + (2 << 20), 4 << 20),
                             usable_vmem))
        return pl.pallas_call(
            mlp_classifier_kernel,
            out_shape=jax.ShapeDtypeStruct((batch_p, c_p), jnp.float32),
            grid=grid,
            in_specs=[
                pl.BlockSpec((tm, in_feats), lambda i: (i, 0)),
                resident((in_feats, h1_p)), resident((1, h1_p)),
                resident((h1_p, h2_p)), resident((1, h2_p)),
                resident((h2_p, c_p)), resident((1, c_p)),
            ],
            out_specs=pl.BlockSpec((tm, c_p), lambda i: (i, 0)),
            compiler_params=pltpu.CompilerParams(
                dimension_semantics=("parallel",),
                vmem_limit_bytes=vmem_limit),
            cost_estimate=cost,
        )

    args = (x_in, w1_p, b1_p, w2_p, b2_p, w3_p, b3_p)
    try:
        out_p = build(True)(*args)
    except Exception:
        # Fallback for jax/libtpu versions that reject pl.Buffered(1) on
        # resident inputs: default double-buffering.
        out_p = build(False)(*args)

    return out_p[:batch, :classes]


def mlp_reference(x, params):
    w1, b1, w2, b2, w3, b3 = params
    h1 = x @ w1 + b1
    h1 = jnp.where(h1 > 0, h1, 0.01 * h1)
    h2 = h1 @ w2 + b2
    logits = h2 @ w3 + b3
    return jax.nn.softmax(logits, axis=1)


def init_params(key, in_feats, classes):
    h1 = in_feats // 2
    h2 = in_feats // 4
    ks = jax.random.split(key, 6)

    def linear(kw, kb, fan_in, fan_out):
        # PyTorch-style uniform(-1/sqrt(fan_in), 1/sqrt(fan_in)), deterministic.
        bound = 1.0 / jnp.sqrt(jnp.float32(fan_in))
        w = jax.random.uniform(kw, (fan_in, fan_out), jnp.float32, -bound, bound)
        b = jax.random.uniform(kb, (1, fan_out), jnp.float32, -bound, bound)
        return w, b

    w1, b1 = linear(ks[0], ks[1], in_feats, h1)
    w2, b2 = linear(ks[2], ks[3], h1, h2)
    w3, b3 = linear(ks[4], ks[5], h2, classes)
    return (w1, b1, w2, b2, w3, b3)


if __name__ == "__main__":
    in_feats = 32
    classes = 8
    batch = 8

    key = jax.random.PRNGKey(0)
    kx, kp = jax.random.split(key)
    x = jax.random.normal(kx, (batch, in_feats), jnp.float32)
    params = init_params(kp, in_feats, classes)

    out = mlp_classifier(x, params)
    jax.block_until_ready(out)

    ref = mlp_reference(x, params)

    assert out.shape == (batch, classes)
    # Exact softmax normalization: rows sum to 1 up to f32 rounding.
    assert bool(jnp.allclose(jnp.sum(out, axis=1), 1.0, atol=1e-4))
    # bf16 matmul operands -> loose elementwise tolerance vs f32 reference.
    assert bool(jnp.allclose(out, ref, atol=3e-2))

    print("KERNEL_OK")
</pallas_src>

<mosaic_0001>
module attributes {stable_mosaic.version = 11 : i64} {
  func.func @mlp_classifier_kernel(%arg0: i32, %arg1: memref<8x32xf32, #tpu.memory_space<vmem>>, %arg2: memref<32x128xbf16, #tpu.memory_space<vmem>>, %arg3: memref<1x128xf32, #tpu.memory_space<vmem>>, %arg4: memref<128x128xbf16, #tpu.memory_space<vmem>>, %arg5: memref<1x128xf32, #tpu.memory_space<vmem>>, %arg6: memref<128x128xbf16, #tpu.memory_space<vmem>>, %arg7: memref<1x128xf32, #tpu.memory_space<vmem>>, %arg8: memref<8x128xf32, #tpu.memory_space<vmem>>) attributes {dimension_semantics = [#tpu.dimension_semantics<parallel>], iteration_bounds = array<i64: 1>, scalar_prefetch = 0 : i64, scratch_operands = 0 : i64, tpu.core_type = #tpu.core_type<tc>, window_params = [{transform_indices = @transform_0, window_bounds = array<i64: 8, 32>}, {pipeline_mode = #tpu.pipeline_mode<synchronous>, transform_indices = @transform_1, window_bounds = array<i64: 32, 128>}, {pipeline_mode = #tpu.pipeline_mode<synchronous>, transform_indices = @transform_2, window_bounds = array<i64: 1, 128>}, {pipeline_mode = #tpu.pipeline_mode<synchronous>, transform_indices = @transform_3, window_bounds = array<i64: 128, 128>}, {pipeline_mode = #tpu.pipeline_mode<synchronous>, transform_indices = @transform_4, window_bounds = array<i64: 1, 128>}, {pipeline_mode = #tpu.pipeline_mode<synchronous>, transform_indices = @transform_5, window_bounds = array<i64: 128, 128>}, {pipeline_mode = #tpu.pipeline_mode<synchronous>, transform_indices = @transform_6, window_bounds = array<i64: 1, 128>}, {transform_indices = @transform_7, window_bounds = array<i64: 8, 128>}]} {
    %c0 = arith.constant 0 : index
    %c0_0 = arith.constant 0 : index
    %0 = vector.load %arg1[%c0, %c0_0] : memref<8x32xf32, #tpu.memory_space<vmem>>, vector<8x32xf32>
    %1 = arith.truncf %0 : vector<8x32xf32> to vector<8x32xbf16>
    %c0_1 = arith.constant 0 : index
    %c0_2 = arith.constant 0 : index
    %2 = vector.load %arg2[%c0_1, %c0_2] : memref<32x128xbf16, #tpu.memory_space<vmem>>, vector<32x128xbf16>
    %cst = arith.constant dense<0.000000e+00> : vector<8x128xf32>
    %3 = tpu.matmul %1, %2, %cst {dimension_numbers = #tpu.dot_dimension_numbers<[1], [0], [0], [1], [0, 0, 1, 1], [], []>} : vector<8x32xbf16>, vector<32x128xbf16>, vector<8x128xf32> -> vector<8x128xf32>
    %c0_3 = arith.constant 0 : index
    %c0_4 = arith.constant 0 : index
    %4 = vector.load %arg3[%c0_3, %c0_4] : memref<1x128xf32, #tpu.memory_space<vmem>>, vector<1x128xf32>
    %5 = vector.broadcast %4 : vector<1x128xf32> to vector<8x128xf32>
    %6 = arith.addf %3, %5 : vector<8x128xf32>
    %cst_5 = arith.constant 0.000000e+00 : f32
    %7 = vector.broadcast %cst_5 : f32 to vector<8x128xf32>
    %8 = arith.cmpf ogt, %6, %7 : vector<8x128xf32>
    %cst_6 = arith.constant 0.00999999977 : f32
    %9 = vector.broadcast %cst_6 : f32 to vector<8x128xf32>
    %10 = arith.mulf %9, %6 : vector<8x128xf32>
    %11 = arith.select %8, %6, %10 : vector<8x128xi1>, vector<8x128xf32>
    %12 = arith.truncf %11 : vector<8x128xf32> to vector<8x128xbf16>
    %c0_7 = arith.constant 0 : index
    %c0_8 = arith.constant 0 : index
    %13 = vector.load %arg4[%c0_7, %c0_8] : memref<128x128xbf16, #tpu.memory_space<vmem>>, vector<128x128xbf16>
    %cst_9 = arith.constant dense<0.000000e+00> : vector<8x128xf32>
    %14 = tpu.matmul %12, %13, %cst_9 {dimension_numbers = #tpu.dot_dimension_numbers<[1], [0], [0], [1], [0, 0, 1, 1], [], []>} : vector<8x128xbf16>, vector<128x128xbf16>, vector<8x128xf32> -> vector<8x128xf32>
    %c0_10 = arith.constant 0 : index
    %c0_11 = arith.constant 0 : index
    %15 = vector.load %arg5[%c0_10, %c0_11] : memref<1x128xf32, #tpu.memory_space<vmem>>, vector<1x128xf32>
    %16 = vector.broadcast %15 : vector<1x128xf32> to vector<8x128xf32>
    %17 = arith.addf %14, %16 : vector<8x128xf32>
    %18 = arith.truncf %17 : vector<8x128xf32> to vector<8x128xbf16>
    %c0_12 = arith.constant 0 : index
    %c0_13 = arith.constant 0 : index
    %19 = vector.load %arg6[%c0_12, %c0_13] : memref<128x128xbf16, #tpu.memory_space<vmem>>, vector<128x128xbf16>
    %cst_14 = arith.constant dense<0.000000e+00> : vector<8x128xf32>
    %20 = tpu.matmul %18, %19, %cst_14 {dimension_numbers = #tpu.dot_dimension_numbers<[1], [0], [0], [1], [0, 0, 1, 1], [], []>} : vector<8x128xbf16>, vector<128x128xbf16>, vector<8x128xf32> -> vector<8x128xf32>
    %c0_15 = arith.constant 0 : index
    %c0_16 = arith.constant 0 : index
    %21 = vector.load %arg7[%c0_15, %c0_16] : memref<1x128xf32, #tpu.memory_space<vmem>>, vector<1x128xf32>
    %22 = vector.broadcast %21 : vector<1x128xf32> to vector<8x128xf32>
    %23 = arith.addf %20, %22 : vector<8x128xf32>
    %cst_17 = arith.constant dense<0xFF800000> : vector<8xf32>
    %24 = vector.multi_reduction <maximumf>, %23, %cst_17 [1] : vector<8x128xf32> to vector<8xf32>
    %25 = vector.shape_cast %24 : vector<8xf32> to vector<8x1xf32>
    %26 = vector.broadcast %25 : vector<8x1xf32> to vector<8x128xf32>
    %27 = arith.subf %23, %26 : vector<8x128xf32>
    %28 = math.exp %27 : vector<8x128xf32>
    %cst_18 = arith.constant dense<0.000000e+00> : vector<8xf32>
    %29 = vector.multi_reduction <add>, %28, %cst_18 [1] : vector<8x128xf32> to vector<8xf32>
    %30 = vector.shape_cast %29 : vector<8xf32> to vector<8x1xf32>
    %31 = vector.broadcast %30 : vector<8x1xf32> to vector<8x128xf32>
    %32 = arith.divf %28, %31 : vector<8x128xf32>
    %c0_19 = arith.constant 0 : index
    %c0_20 = arith.constant 0 : index
    %33 = vector.load %arg8[%c0_19, %c0_20] : memref<8x128xf32, #tpu.memory_space<vmem>>, vector<8x128xf32>
    tpu.vector_store %arg8[%c0_19, %c0_20], %32 {strides = array<i32>} : memref<8x128xf32, #tpu.memory_space<vmem>>, vector<8x128xf32>,
    return
  }
  func.func @transform_0(%arg0: i32) -> (i32, i32) {
    %c0_i32 = arith.constant 0 : i32
    %c0_i32_0 = arith.constant 0 : i32
    return %arg0, %c0_i32 : i32, i32
  }
  func.func @transform_1(%arg0: i32) -> (i32, i32) {
    %c0_i32 = arith.constant 0 : i32
    %c0_i32_0 = arith.constant 0 : i32
    %c0_i32_1 = arith.constant 0 : i32
    return %c0_i32, %c0_i32_0 : i32, i32
  }
  func.func @transform_2(%arg0: i32) -> (i32, i32) {
    %c0_i32 = arith.constant 0 : i32
    %c0_i32_0 = arith.constant 0 : i32
    %c0_i32_1 = arith.constant 0 : i32
    return %c0_i32, %c0_i32_0 : i32, i32
  }
  func.func @transform_3(%arg0: i32) -> (i32, i32) {
    %c0_i32 = arith.constant 0 : i32
    %c0_i32_0 = arith.constant 0 : i32
    %c0_i32_1 = arith.constant 0 : i32
    return %c0_i32, %c0_i32_0 : i32, i32
  }
  func.func @transform_4(%arg0: i32) -> (i32, i32) {
    %c0_i32 = arith.constant 0 : i32
    %c0_i32_0 = arith.constant 0 : i32
    %c0_i32_1 = arith.constant 0 : i32
    return %c0_i32, %c0_i32_0 : i32, i32
  }
  func.func @transform_5(%arg0: i32) -> (i32, i32) {
    %c0_i32 = arith.constant 0 : i32
    %c0_i32_0 = arith.constant 0 : i32
    %c0_i32_1 = arith.constant 0 : i32
    return %c0_i32, %c0_i32_0 : i32, i32
  }
  func.func @transform_6(%arg0: i32) -> (i32, i32) {
    %c0_i32 = arith.constant 0 : i32
    %c0_i32_0 = arith.constant 0 : i32
    %c0_i32_1 = arith.constant 0 : i32
    return %c0_i32, %c0_i32_0 : i32, i32
  }
  func.func @transform_7(%arg0: i32) -> (i32, i32) {
    %c0_i32 = arith.constant 0 : i32
    %c0_i32_0 = arith.constant 0 : i32
    return %arg0, %c0_i32 : i32, i32
  }
}

module attributes {stable_mosaic.version = 11 : i64} {
  func.func @mlp_classifier_kernel(%arg0: i32, %arg1: memref<8x32xf32, #tpu.memory_space<vmem>>, %arg2: memref<32x128xbf16, #tpu.memory_space<vmem>>, %arg3: memref<1x128xf32, #tpu.memory_space<vmem>>, %arg4: memref<128x128xbf16, #tpu.memory_space<vmem>>, %arg5: memref<1x128xf32, #tpu.memory_space<vmem>>, %arg6: memref<128x128xbf16, #tpu.memory_space<vmem>>, %arg7: memref<1x128xf32, #tpu.memory_space<vmem>>, %arg8: memref<8x128xf32, #tpu.memory_space<vmem>>) attributes {dimension_semantics = [#tpu.dimension_semantics<parallel>], iteration_bounds = array<i64: 1>, scalar_prefetch = 0 : i64, scratch_operands = 0 : i64, tpu.core_type = #tpu.core_type<tc>, window_params = [{transform_indices = @transform_0, window_bounds = array<i64: 8, 32>}, {pipeline_mode = #tpu.pipeline_mode<synchronous>, transform_indices = @transform_1, window_bounds = array<i64: 32, 128>}, {pipeline_mode = #tpu.pipeline_mode<synchronous>, transform_indices = @transform_2, window_bounds = array<i64: 1, 128>}, {pipeline_mode = #tpu.pipeline_mode<synchronous>, transform_indices = @transform_3, window_bounds = array<i64: 128, 128>}, {pipeline_mode = #tpu.pipeline_mode<synchronous>, transform_indices = @transform_4, window_bounds = array<i64: 1, 128>}, {pipeline_mode = #tpu.pipeline_mode<synchronous>, transform_indices = @transform_5, window_bounds = array<i64: 128, 128>}, {pipeline_mode = #tpu.pipeline_mode<synchronous>, transform_indices = @transform_6, window_bounds = array<i64: 1, 128>}, {transform_indices = @transform_7, window_bounds = array<i64: 8, 128>}]} {
    %c0 = arith.constant 0 : index
    %c0_0 = arith.constant 0 : index
    %0 = vector.load %arg1[%c0, %c0_0] : memref<8x32xf32, #tpu.memory_space<vmem>>, vector<8x32xf32>
    %1 = arith.truncf %0 : vector<8x32xf32> to vector<8x32xbf16>
    %c0_1 = arith.constant 0 : index
    %c0_2 = arith.constant 0 : index
    %2 = vector.load %arg2[%c0_1, %c0_2] : memref<32x128xbf16, #tpu.memory_space<vmem>>, vector<32x128xbf16>
    %cst = arith.constant dense<0.000000e+00> : vector<8x128xf32>
    %3 = tpu.matmul %1, %2, %cst {dimension_numbers = #tpu.dot_dimension_numbers<[1], [0], [0], [1], [0, 0, 1, 1], [], []>} : vector<8x32xbf16>, vector<32x128xbf16>, vector<8x128xf32> -> vector<8x128xf32>
    %c0_3 = arith.constant 0 : index
    %c0_4 = arith.constant 0 : index
    %4 = vector.load %arg3[%c0_3, %c0_4] : memref<1x128xf32, #tpu.memory_space<vmem>>, vector<1x128xf32>
    %5 = vector.broadcast %4 : vector<1x128xf32> to vector<8x128xf32>
    %6 = arith.addf %3, %5 : vector<8x128xf32>
    %cst_5 = arith.constant 0.000000e+00 : f32
    %7 = vector.broadcast %cst_5 : f32 to vector<8x128xf32>
    %8 = arith.cmpf ogt, %6, %7 : vector<8x128xf32>
    %cst_6 = arith.constant 0.00999999977 : f32
    %9 = vector.broadcast %cst_6 : f32 to vector<8x128xf32>
    %10 = arith.mulf %9, %6 : vector<8x128xf32>
    %11 = arith.select %8, %6, %10 : vector<8x128xi1>, vector<8x128xf32>
    %12 = arith.truncf %11 : vector<8x128xf32> to vector<8x128xbf16>
    %c0_7 = arith.constant 0 : index
    %c0_8 = arith.constant 0 : index
    %13 = vector.load %arg4[%c0_7, %c0_8] : memref<128x128xbf16, #tpu.memory_space<vmem>>, vector<128x128xbf16>
    %cst_9 = arith.constant dense<0.000000e+00> : vector<8x128xf32>
    %14 = tpu.matmul %12, %13, %cst_9 {dimension_numbers = #tpu.dot_dimension_numbers<[1], [0], [0], [1], [0, 0, 1, 1], [], []>} : vector<8x128xbf16>, vector<128x128xbf16>, vector<8x128xf32> -> vector<8x128xf32>
    %c0_10 = arith.constant 0 : index
    %c0_11 = arith.constant 0 : index
    %15 = vector.load %arg5[%c0_10, %c0_11] : memref<1x128xf32, #tpu.memory_space<vmem>>, vector<1x128xf32>
    %16 = vector.broadcast %15 : vector<1x128xf32> to vector<8x128xf32>
    %17 = arith.addf %14, %16 : vector<8x128xf32>
    %18 = arith.truncf %17 : vector<8x128xf32> to vector<8x128xbf16>
    %c0_12 = arith.constant 0 : index
    %c0_13 = arith.constant 0 : index
    %19 = vector.load %arg6[%c0_12, %c0_13] : memref<128x128xbf16, #tpu.memory_space<vmem>>, vector<128x128xbf16>
    %cst_14 = arith.constant dense<0.000000e+00> : vector<8x128xf32>
    %20 = tpu.matmul %18, %19, %cst_14 {dimension_numbers = #tpu.dot_dimension_numbers<[1], [0], [0], [1], [0, 0, 1, 1], [], []>} : vector<8x128xbf16>, vector<128x128xbf16>, vector<8x128xf32> -> vector<8x128xf32>
    %c0_15 = arith.constant 0 : index
    %c0_16 = arith.constant 0 : index
    %21 = vector.load %arg7[%c0_15, %c0_16] : memref<1x128xf32, #tpu.memory_space<vmem>>, vector<1x128xf32>
    %22 = vector.broadcast %21 : vector<1x128xf32> to vector<8x128xf32>
    %23 = arith.addf %20, %22 : vector<8x128xf32>
    %cst_17 = arith.constant dense<0xFF800000> : vector<8xf32>
    %24 = vector.multi_reduction <maximumf>, %23, %cst_17 [1] : vector<8x128xf32> to vector<8xf32>
    %25 = vector.shape_cast %24 : vector<8xf32> to vector<8x1xf32>
    %26 = vector.broadcast %25 : vector<8x1xf32> to vector<8x128xf32>
    %27 = arith.subf %23, %26 : vector<8x128xf32>
    %28 = math.exp %27 : vector<8x128xf32>
    %cst_18 = arith.constant dense<0.000000e+00> : vector<8xf32>
    %29 = vector.multi_reduction <add>, %28, %cst_18 [1] : vector<8x128xf32> to vector<8xf32>
    %30 = vector.shape_cast %29 : vector<8xf32> to vector<8x1xf32>
    %31 = vector.broadcast %30 : vector<8x1xf32> to vector<8x128xf32>
    %32 = arith.divf %28, %31 : vector<8x128xf32>
    %c0_19 = arith.constant 0 : index
    %c0_20 = arith.constant 0 : index
    %33 = vector.load %arg8[%c0_19, %c0_20] : memref<8x128xf32, #tpu.memory_space<vmem>>, vector<8x128xf32>
    tpu.vector_store %arg8[%c0_19, %c0_20], %32 {strides = array<i32>} : memref<8x128xf32, #tpu.memory_space<vmem>>, vector<8x128xf32>,
    return
  }
  func.func @transform_0(%arg0: i32) -> (i32, i32) {
    %c0_i32 = arith.constant 0 : i32
    %c0_i32_0 = arith.constant 0 : i32
    return %arg0, %c0_i32 : i32, i32
  }
  func.func @transform_1(%arg0: i32) -> (i32, i32) {
    %c0_i32 = arith.constant 0 : i32
    %c0_i32_0 = arith.constant 0 : i32
    %c0_i32_1 = arith.constant 0 : i32
    return %c0_i32, %c0_i32_0 : i32, i32
  }
  func.func @transform_2(%arg0: i32) -> (i32, i32) {
    %c0_i32 = arith.constant 0 : i32
    %c0_i32_0 = arith.constant 0 : i32
    %c0_i32_1 = arith.constant 0 : i32
    return %c0_i32, %c0_i32_0 : i32, i32
  }
  func.func @transform_3(%arg0: i32) -> (i32, i32) {
    %c0_i32 = arith.constant 0 : i32
    %c0_i32_0 = arith.constant 0 : i32
    %c0_i32_1 = arith.constant 0 : i32
    return %c0_i32, %c0_i32_0 : i32, i32
  }
  func.func @transform_4(%arg0: i32) -> (i32, i32) {
    %c0_i32 = arith.constant 0 : i32
    %c0_i32_0 = arith.constant 0 : i32
    %c0_i32_1 = arith.constant 0 : i32
    return %c0_i32, %c0_i32_0 : i32, i32
  }
  func.func @transform_5(%arg0: i32) -> (i32, i32) {
    %c0_i32 = arith.constant 0 : i32
    %c0_i32_0 = arith.constant 0 : i32
    %c0_i32_1 = arith.constant 0 : i32
    return %c0_i32, %c0_i32_0 : i32, i32
  }
  func.func @transform_6(%arg0: i32) -> (i32, i32) {
    %c0_i32 = arith.constant 0 : i32
    %c0_i32_0 = arith.constant 0 : i32
    %c0_i32_1 = arith.constant 0 : i32
    return %c0_i32, %c0_i32_0 : i32, i32
  }
  func.func @transform_7(%arg0: i32) -> (i32, i32) {
    %c0_i32 = arith.constant 0 : i32
    %c0_i32_0 = arith.constant 0 : i32
    return %arg0, %c0_i32 : i32, i32
  }
}

</mosaic_0001>

<bundles_post_ra>
// kernel: tpu_custom_call.1
= control target key start
LH: loop header
LB: loop body
LE: loop exit
PB: predicated region body
PF: predicated region fallthrough
CT: control target
= control target key end

     0   :  { %12 = vsyncpa [#allocation3], 0  ;;  %s774_s0 = inlined_call_operand.hbm [shape: f32[8,32], index: 0, kind: input, shape index: {}]   ;;  %s775_s1 = inlined_call_operand.hbm [shape: bf16[32,128], index: 1, kind: input, shape index: {}]   ;;  %s776_s2 = inlined_call_operand.vmem [shape: f32[1,128], index: 2, kind: input, shape index: {}]   ;;  %s777_s3 = inlined_call_operand.hbm [shape: bf16[128,128], index: 3, kind: input, shape index: {}]   ;;  %s778_s4 = inlined_call_operand.vmem [shape: f32[1,128], index: 4, kind: input, shape index: {}]   ;;  %s779_s5 = inlined_call_operand.hbm [shape: bf16[128,128], index: 5, kind: input, shape index: {}]   ;;  %s780_s6 = inlined_call_operand.vmem [shape: f32[1,128], index: 6, kind: input, shape index: {}]   ;;  %s781_s7 = inlined_call_operand.hbm [shape: f32[8,128], index: 7, kind: output, shape index: {}]  }
   0x1   :  { %13 = vsyncpa [#allocation6], 0 }
   0x2   :  { %14 = vsyncpa [#allocation9], 0 }
   0x3   :  { %15 = vsyncpa [#allocation4], 0  ;;  %s644_s24 = smov [#allocation5]   ;;  %s526_s28 = scalar_lea.hbm %s775_s1, 256 }
   0x4   :  { %s31_s25 = sshll.u32 %s644_s24, 4  ;;  %p527_p0 = scmp.ne.s32.totalorder %s775_s1, %s526_s28  ;;  %s32_s25 = int_to_ptr.vmem [resolvable:$true] %s31_s25 }
   0x5   :  { %p530_p1 = scmp.lt.u32.totalorder %s526_s28, %s775_s1 }
   0x7   :  { %p532_p2 = pnand %p530_p1, %p527_p0 }
   0x9   :  { %535 = shalt.err (!%p532_p2)
}
   0xa   :  { %s536_s10 = scalar_lea.vmem %s32_s25, 256  ;;  %p541_p4 = scmp.lt.s32.totalorder %s32_s25, %s32_s25 }
   0xb   :  { %p537_p3 = scmp.ne.s32.totalorder %s32_s25, %s536_s10  ;;  %p542_p5 = scmp.lt.s32.totalorder %s536_s10, %s536_s10 }
   0xd   :  { %p543_p6 = por %p542_p5, %p541_p4 }
   0xf   :  { %p544_p7 = pnand %p543_p6, %p537_p3 }
  0x11   :  { %547 = shalt.err (!%p544_p7)
}
  0x12   :  { %s645_s11 = smov 64   ;;  %s646_s12 = smov 4  }
  0x13   :  { %37 = dma.hbm_to_vmem [thread:$0]  %s775_s1, 256, %s32_s25, [#allocation6], %s645_s11, %s645_s11, %s646_s12  }
  0x14   :  { %s647_s15 = smov [#allocation2]   ;;  %s648_s17 = smov [#allocation7]  }
  0x15   :  { %s22_s16 = sshll.u32 %s647_s15, 4  ;;  %s45_s18 = sshll.u32 %s648_s17, 4  ;;  %s23_s16 = int_to_ptr.vmem [resolvable:$true] %s22_s16  ;;  %s46_s18 = int_to_ptr.vmem [resolvable:$true] %s45_s18 }
  0x16   :  { %s548_s21 = scalar_lea.hbm %s774_s0, 128 }
  0x17   :  { %p549_p8 = scmp.ne.s32.totalorder %s774_s0, %s548_s21  ;;  %p552_p9 = scmp.lt.u32.totalorder %s548_s21, %s774_s0 }
  0x19   :  { %p554_p10 = pnand %p552_p9, %p549_p8 }
  0x1b   :  { %557 = shalt.err (!%p554_p10)
}
  0x1c   :  { %s558_s1 = scalar_lea.vmem %s23_s16, 128  ;;  %p563_p12 = scmp.lt.s32.totalorder %s23_s16, %s23_s16 }
  0x1d   :  { %p559_p11 = scmp.ne.s32.totalorder %s23_s16, %s558_s1  ;;  %p564_p13 = scmp.lt.s32.totalorder %s558_s1, %s558_s1 }
  0x1f   :  { %p565_p0 = por %p564_p13, %p563_p12 }
  0x21   :  { %p566_p1 = pnand %p565_p0, %p559_p11 }
  0x23   :  { %569 = shalt.err (!%p566_p1)
}
  0x24   :  { %25 = dma.hbm_to_vmem [thread:$0]  %s774_s0, 128, %s23_s16, [#allocation3]  }
  0x25   :  { %s570_s30 = scalar_lea.hbm %s777_s3, 1024 }
  0x26   :  { %p571_p2 = scmp.ne.s32.totalorder %s777_s3, %s570_s30  ;;  %p574_p3 = scmp.lt.u32.totalorder %s570_s30, %s777_s3 }
  0x28   :  { %p576_p4 = pnand %p574_p3, %p571_p2 }
  0x2a   :  { %579 = shalt.err (!%p576_p4)
}
  0x2b   :  { %s580_s14 = scalar_lea.vmem %s46_s18, 1024  ;;  %p585_p6 = scmp.lt.s32.totalorder %s46_s18, %s46_s18 }
  0x2c   :  { %p581_p5 = scmp.ne.s32.totalorder %s46_s18, %s580_s14  ;;  %p586_p7 = scmp.lt.s32.totalorder %s580_s14, %s580_s14 }
  0x2e   :  { %p587_p8 = por %p586_p7, %p585_p6 }
  0x30   :  { %p588_p9 = pnand %p587_p8, %p581_p5 }
  0x32   :  { %591 = shalt.err (!%p588_p9)
}
  0x33   :  { %51 = dma.hbm_to_vmem [thread:$0]  %s777_s3, 1024, %s46_s18, [#allocation6], %s645_s11, %s645_s11, %s646_s12  }
  0x34   :  { %s649_s16 = smov [#allocation8]   ;;  %s592_s21 = scalar_lea.hbm %s779_s5, 1024 }
  0x35   :  { %s59_s17 = sshll.u32 %s649_s16, 4  ;;  %p593_p10 = scmp.ne.s32.totalorder %s779_s5, %s592_s21  ;;  %s60_s17 = int_to_ptr.vmem [resolvable:$true] %s59_s17 }
  0x36   :  { %p596_p11 = scmp.lt.u32.totalorder %s592_s21, %s779_s5 }
  0x38   :  { %p598_p12 = pnand %p596_p11, %p593_p10 }
  0x3a   :  { %601 = shalt.err (!%p598_p12)
}
  0x3b   :  { %s602_s1 = scalar_lea.vmem %s60_s17, 1024  ;;  %p607_p0 = scmp.lt.s32.totalorder %s60_s17, %s60_s17 }
  0x3c   :  { %p603_p13 = scmp.ne.s32.totalorder %s60_s17, %s602_s1  ;;  %p608_p1 = scmp.lt.s32.totalorder %s602_s1, %s602_s1 }
  0x3e   :  { %p609_p2 = por %p608_p1, %p607_p0 }
  0x40   :  { %p610_p3 = pnand %p609_p2, %p603_p13 }
  0x42   :  { %613 = shalt.err (!%p610_p3)
}
  0x43   :  { %65 = dma.hbm_to_vmem [thread:$0]  %s779_s5, 1024, %s60_s17, [#allocation9], %s645_s11, %s645_s11, %s646_s12  }
  0x44   :  { %636 = dma.done.wait [#allocation3], 128  }
  0x45   :  { %637 = vsyncadd [#allocation3], 4294967168 }
  0x46   :  { %638 = dma.done.wait [#allocation6], 1280  }
  0x47   :  { %639 = vsyncadd [#allocation6], 4294966016 }
  0x48   :  { %640 = dma.done.wait [#allocation9], 1024  }
  0x49   :  { %641 = vsyncadd [#allocation9], 4294966272  ;;  %v650_v0 = vmov 0.0   ;;  %vm651_vm0 = vmmov 0   ;;  %v504_v1 = vld [vmem:[#allocation5] sm:$0xff]   ;;  %v505_v2 = vld [vmem:[#allocation5 + $0x8] sm:$0xff]  }
  0x4a   :  { %447 = vmatprep.subr.bf16.mxu0 %v650_v0  ;;  %451 = vmatprep.mubr.msk.bf16.mxu0 %vm651_vm0, %v650_v0  ;;  %v81_v3 = vld [vmem:[#allocation2] sm:$0xff]  ;;  %v506_v4 = vld [vmem:[#allocation7] sm:$0xff]   ;;  %vm106_vm1 = vcmask 261120   ;;  %v508_v7 = vld [vmem:[#allocation7 + $0x10] sm:$0xff]  }
  0x4b   :  { %455 = vmatprep.subr.bf16.mxu1 %v650_v0  ;;  %471 = vmatprep.mubr.msk.bf16.mxu1 %vm651_vm0, %v650_v0  ;;  %v82_v5 = vpack.c.bf16 %v81_v3, %v81_v3  ;;  %v507_v6 = vld [vmem:[#allocation7 + $0x8] sm:$0xff]   ;;  %v509_v8 = vld [vmem:[#allocation7 + $0x18] sm:$0xff]   ;;  %v510_v9 = vld [vmem:[#allocation7 + $0x20] sm:$0xff]  }
  0x4c   :  { %448 = vmatpush3.bf16.msra.mxu0 %v504_v1  ;;  %456 = vmatpush3.bf16.msra.mxu1 %v506_v4  ;;  %v511_v10 = vld [vmem:[#allocation7 + $0x28] sm:$0xff]   ;;  %v512_v11 = vld [vmem:[#allocation7 + $0x30] sm:$0xff]   ;;  %v513_v12 = vld [vmem:[#allocation7 + $0x38] sm:$0xff]  }
  0x4d   :  { %449 = vmatprep.subr.bf16.mxu0 %v650_v0  ;;  %457 = vmatprep.subr.bf16.mxu1 %v650_v0  ;;  %v514_v13 = vld [vmem:[#allocation8] sm:$0xff]   ;;  %v515_v14 = vld [vmem:[#allocation8 + $0x8] sm:$0xff]   ;;  %v516_v15 = vld [vmem:[#allocation8 + $0x10] sm:$0xff]  }
  0x4e   :  { %v517_v16 = vld [vmem:[#allocation8 + $0x18] sm:$0xff]   ;;  %v518_v17 = vld [vmem:[#allocation8 + $0x20] sm:$0xff]   ;;  %v519_v18 = vld [vmem:[#allocation8 + $0x28] sm:$0xff]  }
  0x4f   :  { %v520_v19 = vld [vmem:[#allocation8 + $0x30] sm:$0xff]   ;;  %v404_v20 = vld [vmem:[%s776_s2] ss:$0 sm:$0xff]  ;;  %v521_v29 = vld [vmem:[#allocation8 + $0x38] sm:$0xff]  }
  0x50   :  { %450 = vmatpush3.bf16.msra.mxu0 %v505_v2  ;;  %458 = vmatpush3.bf16.msra.mxu1 %v507_v6  ;;  %v408_v30 = vld [vmem:[%s778_s4] ss:$0 sm:$0xff]  ;;  %s652_s4 = smov [#allocation10]  }
  0x51   :  { %475 = vmatprep.subr.bf16.mxu0 %v650_v0  ;;  %459 = vmatprep.subr.bf16.mxu1 %v650_v0  ;;  %v417_v37 = vld [vmem:[%s780_s6] ss:$0 sm:$0xff]  ;;  %s393_s28 = sshll.u32 %s652_s4, 4  ;;  %s394_s28 = int_to_ptr.vmem [resolvable:$true] %s393_s28 }
  0x52   :  { %s614_s6 = scalar_lea.vmem %s394_s28, 128  ;;  %p619_p5 = scmp.lt.s32.totalorder %s394_s28, %s394_s28 }
  0x53   :  { %452 = vmatmul.mubr.msk.bf16.vlgmr.msra.gmra.mrb[0].mxu0 %vm106_vm1, %v82_v5  ;;  %p615_p4 = scmp.ne.s32.totalorder %s394_s28, %s614_s6  ;;  %p620_p6 = scmp.lt.s32.totalorder %s614_s6, %s614_s6 }
  0x54   :  { %491 = vmatprep.mubr.msk.bf16.mxu0 %vm651_vm0, %v650_v0  ;;  %460 = vmatpush3.bf16.msra.mxu1 %v508_v7 }
  0x55   :  { %461 = vmatprep.subr.bf16.mxu1 %v650_v0  ;;  %476 = vmatpush3.bf16.msra.mxu0 %v514_v13  ;;  %p621_p7 = por %p620_p6, %p619_p5 }
  0x56   :  { %477 = vmatprep.subr.bf16.mxu0 %v650_v0 }
  0x57   :  { %p622_p8 = pnand %p621_p7, %p615_p4 }
  0x58   :  { %462 = vmatpush3.bf16.msra.mxu1 %v509_v8 }
  0x59   :  { %463 = vmatprep.subr.bf16.mxu1 %v650_v0  ;;  %478 = vmatpush3.bf16.msra.mxu0 %v515_v14 }
  0x5a   :  { %479 = vmatprep.subr.bf16.mxu0 %v650_v0 }
  0x5c   :  { %464 = vmatpush3.bf16.msra.mxu1 %v510_v9 }
  0x5d   :  { %465 = vmatprep.subr.bf16.mxu1 %v650_v0  ;;  %480 = vmatpush3.bf16.msra.mxu0 %v516_v15 }
  0x5e   :  { %481 = vmatprep.subr.bf16.mxu0 %v650_v0 }
  0x60   :  { %466 = vmatpush3.bf16.msra.mxu1 %v511_v10 }
  0x61   :  { %467 = vmatprep.subr.bf16.mxu1 %v650_v0  ;;  %482 = vmatpush3.bf16.msra.mxu0 %v517_v16 }
  0x62   :  { %483 = vmatprep.subr.bf16.mxu0 %v650_v0 }
  0x64   :  { %468 = vmatpush3.bf16.msra.mxu1 %v512_v11 }
  0x65   :  { %469 = vmatprep.subr.bf16.mxu1 %v650_v0  ;;  %484 = vmatpush3.bf16.msra.mxu0 %v518_v17 }
  0x66   :  { %485 = vmatprep.subr.bf16.mxu0 %v650_v0 }
  0x68   :  { %470 = vmatpush3.bf16.msra.mxu1 %v513_v12 }
  0x69   :  { %486 = vmatpush3.bf16.msra.mxu0 %v519_v18 }
  0x6a   :  { %487 = vmatprep.subr.bf16.mxu0 %v650_v0 }
  0x6d   :  { %488 = vmatpush3.bf16.msra.mxu0 %v520_v19 }
  0x6e   :  { %489 = vmatprep.subr.bf16.mxu0 %v650_v0 }
  0x71   :  { %490 = vmatpush3.bf16.msra.mxu0 %v521_v29 }
 0x126   :  { %v144_v21 = vpop.f32.mrb[0].mxu0 }
 0x127   :  { %v145_v22 = vadd.f32 %v404_v20, %v144_v21  ;;  %v453_v23 = vpop.f32.mrb[1].mxu0 }
 0x128   :  { %v147_v24 = vpop.f32.mrb[2].mxu0 }
 0x129   :  { %vm150_vm2 = vcmp.gt.f32.partialorder %v145_v22, 0.0  ;;  %v151_v25 = vmul.f32 0.01, %v145_v22  ;;  %v454_v26 = vpop.f32.mrb[3].mxu0 }
 0x12b   :  { %v152_v27 = vsel %vm150_vm2, %v145_v22, %v151_v25 }
 0x12c   :  { %v153_v28 = vpack.c.bf16 %v152_v27, %v152_v27 }
 0x12e   :  { %472 = vmatmul.mubr.bf16.vlgmr.msra.gmra.mrb[0].mxu1 %v153_v28 }
 0x201   :  { %v259_v31 = vpop.f32.mrb[0].mxu1 }
 0x202   :  { %v260_v32 = vadd.f32 %v408_v30, %v259_v31  ;;  %v473_v33 = vpop.f32.mrb[1].mxu1 }
 0x203   :  { %v262_v34 = vpop.f32.mrb[2].mxu1 }
 0x204   :  { %v265_v35 = vpack.c.bf16 %v260_v32, %v260_v32  ;;  %v474_v36 = vpop.f32.mrb[3].mxu1 }
 0x206   :  { %492 = vmatmul.mubr.bf16.vlgmr.msra.gmra.mrb[4].mxu0 %v265_v35 }
 0x2d9   :  { %v371_v38 = vpop.f32.mrb[4].mxu0 }
 0x2da   :  { %v372_v39 = vadd.f32 %v417_v37, %v371_v38  ;;  %v493_v40 = vpop.f32.mrb[5].mxu0 }
 0x2db   :  { %v374_v41 = vpop.f32.mrb[6].mxu0 }
 0x2dc   :  { %377 = vmax.xlane.f32.xlu0 %v372_v39  ;;  %v494_v42 = vpop.f32.mrb[7].mxu0 }
 0x369   :  { %v378_v43 = vpop.xlane.xlu0 %377 }
 0x36a   :  { %v379_v44 = vsub.f32 %v372_v39, %v378_v43 }
 0x36c   :  { %v380_v45 = vmul.f32 1.442695, %v379_v44 }
 0x36e   :  { %522 = vpow2.f32 %v380_v45 }
 0x378   :  { %v523_v46 = vpop.eup %522 }
 0x379   :  { %382 = vadd.xlane.f32.xlu0 %v523_v46 }
 0x406   :  { %v383_v47 = vpop.xlane.xlu0 %382 }
 0x407   :  { %524 = vrcp.f32 %v383_v47 }
 0x411   :  { %v525_v48 = vpop.eup %524 }
 0x412   :  { %v385_v49 = vmul.f32 %v525_v48, %v523_v46 }
 0x414   :  { %386 = vst [vmem:[#allocation10] sm:$0xff] %v385_v49 }
 0x415   :  { %625 = shalt.err (!%p622_p8)
}
 0x416   :  { %s626_s8 = scalar_lea.hbm %s781_s7, 128 }
 0x417   :  { %p627_p9 = scmp.ne.s32.totalorder %s781_s7, %s626_s8  ;;  %p630_p10 = scmp.lt.u32.totalorder %s626_s8, %s781_s7 }
 0x419   :  { %p632_p11 = pnand %p630_p10, %p627_p9 }
 0x41b   :  { %635 = shalt.err (!%p632_p11)
}
 0x41c   :  { %396 = dma.vmem_to_hbm [thread:$0]  %s394_s28, 128, %s781_s7, [#allocation4]  }
 0x41d   :  { %642 = dma.done.wait [#allocation4], 128  }
 0x41e   :  { %643 = vsyncadd [#allocation4], 4294967168 }
 0x41f   :  { %400 = vsyncpa [#allocation3], 1 }
 0x420   :  { %401 = vsyncpa [#allocation6], 1 }
 0x421   :  { %402 = vsyncpa [#allocation9], 1 }
 0x422   :  { %403 = vsyncpa [#allocation4], 1 }

// kernel: tpu_custom_call.1
= control target key start
LH: loop header
LB: loop body
LE: loop exit
PB: predicated region body
PF: predicated region fallthrough
CT: control target
= control target key end

     0   :  { %12 = vsyncpa [#allocation3], 0  ;;  %s774_s0 = inlined_call_operand.hbm [shape: f32[8,32], index: 0, kind: input, shape index: {}]   ;;  %s775_s1 = inlined_call_operand.hbm [shape: bf16[32,128], index: 1, kind: input, shape index: {}]   ;;  %s776_s2 = inlined_call_operand.vmem [shape: f32[1,128], index: 2, kind: input, shape index: {}]   ;;  %s777_s3 = inlined_call_operand.hbm [shape: bf16[128,128], index: 3, kind: input, shape index: {}]   ;;  %s778_s4 = inlined_call_operand.vmem [shape: f32[1,128], index: 4, kind: input, shape index: {}]   ;;  %s779_s5 = inlined_call_operand.hbm [shape: bf16[128,128], index: 5, kind: input, shape index: {}]   ;;  %s780_s6 = inlined_call_operand.vmem [shape: f32[1,128], index: 6, kind: input, shape index: {}]   ;;  %s781_s7 = inlined_call_operand.hbm [shape: f32[8,128], index: 7, kind: output, shape index: {}]  }
   0x1   :  { %13 = vsyncpa [#allocation6], 0 }
   0x2   :  { %14 = vsyncpa [#allocation9], 0 }
   0x3   :  { %15 = vsyncpa [#allocation4], 0  ;;  %s644_s24 = smov [#allocation5]   ;;  %s526_s28 = scalar_lea.hbm %s775_s1, 256 }
   0x4   :  { %s31_s25 = sshll.u32 %s644_s24, 4  ;;  %p527_p0 = scmp.ne.s32.totalorder %s775_s1, %s526_s28  ;;  %s32_s25 = int_to_ptr.vmem [resolvable:$true] %s31_s25 }
   0x5   :  { %p530_p1 = scmp.lt.u32.totalorder %s526_s28, %s775_s1 }
   0x7   :  { %p532_p2 = pnand %p530_p1, %p527_p0 }
   0x9   :  { %535 = shalt.err (!%p532_p2)
}
   0xa   :  { %s536_s10 = scalar_lea.vmem %s32_s25, 256  ;;  %p541_p4 = scmp.lt.s32.totalorder %s32_s25, %s32_s25 }
   0xb   :  { %p537_p3 = scmp.ne.s32.totalorder %s32_s25, %s536_s10  ;;  %p542_p5 = scmp.lt.s32.totalorder %s536_s10, %s536_s10 }
   0xd   :  { %p543_p6 = por %p542_p5, %p541_p4 }
   0xf   :  { %p544_p7 = pnand %p543_p6, %p537_p3 }
  0x11   :  { %547 = shalt.err (!%p544_p7)
}
  0x12   :  { %s645_s11 = smov 64   ;;  %s646_s12 = smov 4  }
  0x13   :  { %37 = dma.hbm_to_vmem [thread:$0]  %s775_s1, 256, %s32_s25, [#allocation6], %s645_s11, %s645_s11, %s646_s12  }
  0x14   :  { %s647_s15 = smov [#allocation2]   ;;  %s648_s17 = smov [#allocation7]  }
  0x15   :  { %s22_s16 = sshll.u32 %s647_s15, 4  ;;  %s45_s18 = sshll.u32 %s648_s17, 4  ;;  %s23_s16 = int_to_ptr.vmem [resolvable:$true] %s22_s16  ;;  %s46_s18 = int_to_ptr.vmem [resolvable:$true] %s45_s18 }
  0x16   :  { %s548_s21 = scalar_lea.hbm %s774_s0, 128 }
  0x17   :  { %p549_p8 = scmp.ne.s32.totalorder %s774_s0, %s548_s21  ;;  %p552_p9 = scmp.lt.u32.totalorder %s548_s21, %s774_s0 }
  0x19   :  { %p554_p10 = pnand %p552_p9, %p549_p8 }
  0x1b   :  { %557 = shalt.err (!%p554_p10)
}
  0x1c   :  { %s558_s1 = scalar_lea.vmem %s23_s16, 128  ;;  %p563_p12 = scmp.lt.s32.totalorder %s23_s16, %s23_s16 }
  0x1d   :  { %p559_p11 = scmp.ne.s32.totalorder %s23_s16, %s558_s1  ;;  %p564_p13 = scmp.lt.s32.totalorder %s558_s1, %s558_s1 }
  0x1f   :  { %p565_p0 = por %p564_p13, %p563_p12 }
  0x21   :  { %p566_p1 = pnand %p565_p0, %p559_p11 }
  0x23   :  { %569 = shalt.err (!%p566_p1)
}
  0x24   :  { %25 = dma.hbm_to_vmem [thread:$0]  %s774_s0, 128, %s23_s16, [#allocation3]  }
  0x25   :  { %s570_s30 = scalar_lea.hbm %s777_s3, 1024 }
  0x26   :  { %p571_p2 = scmp.ne.s32.totalorder %s777_s3, %s570_s30  ;;  %p574_p3 = scmp.lt.u32.totalorder %s570_s30, %s777_s3 }
  0x28   :  { %p576_p4 = pnand %p574_p3, %p571_p2 }
  0x2a   :  { %579 = shalt.err (!%p576_p4)
}
  0x2b   :  { %s580_s14 = scalar_lea.vmem %s46_s18, 1024  ;;  %p585_p6 = scmp.lt.s32.totalorder %s46_s18, %s46_s18 }
  0x2c   :  { %p581_p5 = scmp.ne.s32.totalorder %s46_s18, %s580_s14  ;;  %p586_p7 = scmp.lt.s32.totalorder %s580_s14, %s580_s14 }
  0x2e   :  { %p587_p8 = por %p586_p7, %p585_p6 }
  0x30   :  { %p588_p9 = pnand %p587_p8, %p581_p5 }
  0x32   :  { %591 = shalt.err (!%p588_p9)
}
  0x33   :  { %51 = dma.hbm_to_vmem [thread:$0]  %s777_s3, 1024, %s46_s18, [#allocation6], %s645_s11, %s645_s11, %s646_s12  }
  0x34   :  { %s649_s16 = smov [#allocation8]   ;;  %s592_s21 = scalar_lea.hbm %s779_s5, 1024 }
  0x35   :  { %s59_s17 = sshll.u32 %s649_s16, 4  ;;  %p593_p10 = scmp.ne.s32.totalorder %s779_s5, %s592_s21  ;;  %s60_s17 = int_to_ptr.vmem [resolvable:$true] %s59_s17 }
  0x36   :  { %p596_p11 = scmp.lt.u32.totalorder %s592_s21, %s779_s5 }
  0x38   :  { %p598_p12 = pnand %p596_p11, %p593_p10 }
  0x3a   :  { %601 = shalt.err (!%p598_p12)
}
  0x3b   :  { %s602_s1 = scalar_lea.vmem %s60_s17, 1024  ;;  %p607_p0 = scmp.lt.s32.totalorder %s60_s17, %s60_s17 }
  0x3c   :  { %p603_p13 = scmp.ne.s32.totalorder %s60_s17, %s602_s1  ;;  %p608_p1 = scmp.lt.s32.totalorder %s602_s1, %s602_s1 }
  0x3e   :  { %p609_p2 = por %p608_p1, %p607_p0 }
  0x40   :  { %p610_p3 = pnand %p609_p2, %p603_p13 }
  0x42   :  { %613 = shalt.err (!%p610_p3)
}
  0x43   :  { %65 = dma.hbm_to_vmem [thread:$0]  %s779_s5, 1024, %s60_s17, [#allocation9], %s645_s11, %s645_s11, %s646_s12  }
  0x44   :  { %636 = dma.done.wait [#allocation3], 128  }
  0x45   :  { %637 = vsyncadd [#allocation3], 4294967168 }
  0x46   :  { %638 = dma.done.wait [#allocation6], 1280  }
  0x47   :  { %639 = vsyncadd [#allocation6], 4294966016 }
  0x48   :  { %640 = dma.done.wait [#allocation9], 1024  }
  0x49   :  { %641 = vsyncadd [#allocation9], 4294966272  ;;  %v650_v0 = vmov 0.0   ;;  %vm651_vm0 = vmmov 0   ;;  %v504_v1 = vld [vmem:[#allocation5] sm:$0xff]   ;;  %v505_v2 = vld [vmem:[#allocation5 + $0x8] sm:$0xff]  }
  0x4a   :  { %447 = vmatprep.subr.bf16.mxu0 %v650_v0  ;;  %451 = vmatprep.mubr.msk.bf16.mxu0 %vm651_vm0, %v650_v0  ;;  %v81_v3 = vld [vmem:[#allocation2] sm:$0xff]  ;;  %v506_v4 = vld [vmem:[#allocation7] sm:$0xff]   ;;  %vm106_vm1 = vcmask 261120   ;;  %v508_v7 = vld [vmem:[#allocation7 + $0x10] sm:$0xff]  }
  0x4b   :  { %455 = vmatprep.subr.bf16.mxu1 %v650_v0  ;;  %471 = vmatprep.mubr.msk.bf16.mxu1 %vm651_vm0, %v650_v0  ;;  %v82_v5 = vpack.c.bf16 %v81_v3, %v81_v3  ;;  %v507_v6 = vld [vmem:[#allocation7 + $0x8] sm:$0xff]   ;;  %v509_v8 = vld [vmem:[#allocation7 + $0x18] sm:$0xff]   ;;  %v510_v9 = vld [vmem:[#allocation7 + $0x20] sm:$0xff]  }
  0x4c   :  { %448 = vmatpush3.bf16.msra.mxu0 %v504_v1  ;;  %456 = vmatpush3.bf16.msra.mxu1 %v506_v4  ;;  %v511_v10 = vld [vmem:[#allocation7 + $0x28] sm:$0xff]   ;;  %v512_v11 = vld [vmem:[#allocation7 + $0x30] sm:$0xff]   ;;  %v513_v12 = vld [vmem:[#allocation7 + $0x38] sm:$0xff]  }
  0x4d   :  { %449 = vmatprep.subr.bf16.mxu0 %v650_v0  ;;  %457 = vmatprep.subr.bf16.mxu1 %v650_v0  ;;  %v514_v13 = vld [vmem:[#allocation8] sm:$0xff]   ;;  %v515_v14 = vld [vmem:[#allocation8 + $0x8] sm:$0xff]   ;;  %v516_v15 = vld [vmem:[#allocation8 + $0x10] sm:$0xff]  }
  0x4e   :  { %v517_v16 = vld [vmem:[#allocation8 + $0x18] sm:$0xff]   ;;  %v518_v17 = vld [vmem:[#allocation8 + $0x20] sm:$0xff]   ;;  %v519_v18 = vld [vmem:[#allocation8 + $0x28] sm:$0xff]  }
  0x4f   :  { %v520_v19 = vld [vmem:[#allocation8 + $0x30] sm:$0xff]   ;;  %v404_v20 = vld [vmem:[%s776_s2] ss:$0 sm:$0xff]  ;;  %v521_v29 = vld [vmem:[#allocation8 + $0x38] sm:$0xff]  }
  0x50   :  { %450 = vmatpush3.bf16.msra.mxu0 %v505_v2  ;;  %458 = vmatpush3.bf16.msra.mxu1 %v507_v6  ;;  %v408_v30 = vld [vmem:[%s778_s4] ss:$0 sm:$0xff]  ;;  %s652_s4 = smov [#allocation10]  }
  0x51   :  { %475 = vmatprep.subr.bf16.mxu0 %v650_v0  ;;  %459 = vmatprep.subr.bf16.mxu1 %v650_v0  ;;  %v417_v37 = vld [vmem:[%s780_s6] ss:$0 sm:$0xff]  ;;  %s393_s28 = sshll.u32 %s652_s4, 4  ;;  %s394_s28 = int_to_ptr.vmem [resolvable:$true] %s393_s28 }
  0x52   :  { %s614_s6 = scalar_lea.vmem %s394_s28, 128  ;;  %p619_p5 = scmp.lt.s32.totalorder %s394_s28, %s394_s28 }
  0x53   :  { %452 = vmatmul.mubr.msk.bf16.vlgmr.msra.gmra.mrb[0].mxu0 %vm106_vm1, %v82_v5  ;;  %p615_p4 = scmp.ne.s32.totalorder %s394_s28, %s614_s6  ;;  %p620_p6 = scmp.lt.s32.totalorder %s614_s6, %s614_s6 }
  0x54   :  { %491 = vmatprep.mubr.msk.bf16.mxu0 %vm651_vm0, %v650_v0  ;;  %460 = vmatpush3.bf16.msra.mxu1 %v508_v7 }
  0x55   :  { %461 = vmatprep.subr.bf16.mxu1 %v650_v0  ;;  %476 = vmatpush3.bf16.msra.mxu0 %v514_v13  ;;  %p621_p7 = por %p620_p6, %p619_p5 }
  0x56   :  { %477 = vmatprep.subr.bf16.mxu0 %v650_v0 }
  0x57   :  { %p622_p8 = pnand %p621_p7, %p615_p4 }
  0x58   :  { %462 = vmatpush3.bf16.msra.mxu1 %v509_v8 }
  0x59   :  { %463 = vmatprep.subr.bf16.mxu1 %v650_v0  ;;  %478 = vmatpush3.bf16.msra.mxu0 %v515_v14 }
  0x5a   :  { %479 = vmatprep.subr.bf16.mxu0 %v650_v0 }
  0x5c   :  { %464 = vmatpush3.bf16.msra.mxu1 %v510_v9 }
  0x5d   :  { %465 = vmatprep.subr.bf16.mxu1 %v650_v0  ;;  %480 = vmatpush3.bf16.msra.mxu0 %v516_v15 }
  0x5e   :  { %481 = vmatprep.subr.bf16.mxu0 %v650_v0 }
  0x60   :  { %466 = vmatpush3.bf16.msra.mxu1 %v511_v10 }
  0x61   :  { %467 = vmatprep.subr.bf16.mxu1 %v650_v0  ;;  %482 = vmatpush3.bf16.msra.mxu0 %v517_v16 }
  0x62   :  { %483 = vmatprep.subr.bf16.mxu0 %v650_v0 }
  0x64   :  { %468 = vmatpush3.bf16.msra.mxu1 %v512_v11 }
  0x65   :  { %469 = vmatprep.subr.bf16.mxu1 %v650_v0  ;;  %484 = vmatpush3.bf16.msra.mxu0 %v518_v17 }
  0x66   :  { %485 = vmatprep.subr.bf16.mxu0 %v650_v0 }
  0x68   :  { %470 = vmatpush3.bf16.msra.mxu1 %v513_v12 }
  0x69   :  { %486 = vmatpush3.bf16.msra.mxu0 %v519_v18 }
  0x6a   :  { %487 = vmatprep.subr.bf16.mxu0 %v650_v0 }
  0x6d   :  { %488 = vmatpush3.bf16.msra.mxu0 %v520_v19 }
  0x6e   :  { %489 = vmatprep.subr.bf16.mxu0 %v650_v0 }
  0x71   :  { %490 = vmatpush3.bf16.msra.mxu0 %v521_v29 }
 0x126   :  { %v144_v21 = vpop.f32.mrb[0].mxu0 }
 0x127   :  { %v145_v22 = vadd.f32 %v404_v20, %v144_v21  ;;  %v453_v23 = vpop.f32.mrb[1].mxu0 }
 0x128   :  { %v147_v24 = vpop.f32.mrb[2].mxu0 }
 0x129   :  { %vm150_vm2 = vcmp.gt.f32.partialorder %v145_v22, 0.0  ;;  %v151_v25 = vmul.f32 0.01, %v145_v22  ;;  %v454_v26 = vpop.f32.mrb[3].mxu0 }
 0x12b   :  { %v152_v27 = vsel %vm150_vm2, %v145_v22, %v151_v25 }
 0x12c   :  { %v153_v28 = vpack.c.bf16 %v152_v27, %v152_v27 }
 0x12e   :  { %472 = vmatmul.mubr.bf16.vlgmr.msra.gmra.mrb[0].mxu1 %v153_v28 }
 0x201   :  { %v259_v31 = vpop.f32.mrb[0].mxu1 }
 0x202   :  { %v260_v32 = vadd.f32 %v408_v30, %v259_v31  ;;  %v473_v33 = vpop.f32.mrb[1].mxu1 }
 0x203   :  { %v262_v34 = vpop.f32.mrb[2].mxu1 }
 0x204   :  { %v265_v35 = vpack.c.bf16 %v260_v32, %v260_v32  ;;  %v474_v36 = vpop.f32.mrb[3].mxu1 }
 0x206   :  { %492 = vmatmul.mubr.bf16.vlgmr.msra.gmra.mrb[4].mxu0 %v265_v35 }
 0x2d9   :  { %v371_v38 = vpop.f32.mrb[4].mxu0 }
 0x2da   :  { %v372_v39 = vadd.f32 %v417_v37, %v371_v38  ;;  %v493_v40 = vpop.f32.mrb[5].mxu0 }
 0x2db   :  { %v374_v41 = vpop.f32.mrb[6].mxu0 }
 0x2dc   :  { %377 = vmax.xlane.f32.xlu0 %v372_v39  ;;  %v494_v42 = vpop.f32.mrb[7].mxu0 }
 0x369   :  { %v378_v43 = vpop.xlane.xlu0 %377 }
 0x36a   :  { %v379_v44 = vsub.f32 %v372_v39, %v378_v43 }
 0x36c   :  { %v380_v45 = vmul.f32 1.442695, %v379_v44 }
 0x36e   :  { %522 = vpow2.f32 %v380_v45 }
 0x378   :  { %v523_v46 = vpop.eup %522 }
 0x379   :  { %382 = vadd.xlane.f32.xlu0 %v523_v46 }
 0x406   :  { %v383_v47 = vpop.xlane.xlu0 %382 }
 0x407   :  { %524 = vrcp.f32 %v383_v47 }
 0x411   :  { %v525_v48 = vpop.eup %524 }
 0x412   :  { %v385_v49 = vmul.f32 %v525_v48, %v523_v46 }
 0x414   :  { %386 = vst [vmem:[#allocation10] sm:$0xff] %v385_v49 }
 0x415   :  { %625 = shalt.err (!%p622_p8)
}
 0x416   :  { %s626_s8 = scalar_lea.hbm %s781_s7, 128 }
 0x417   :  { %p627_p9 = scmp.ne.s32.totalorder %s781_s7, %s626_s8  ;;  %p630_p10 = scmp.lt.u32.totalorder %s626_s8, %s781_s7 }
 0x419   :  { %p632_p11 = pnand %p630_p10, %p627_p9 }
 0x41b   :  { %635 = shalt.err (!%p632_p11)
}
 0x41c   :  { %396 = dma.vmem_to_hbm [thread:$0]  %s394_s28, 128, %s781_s7, [#allocation4]  }
 0x41d   :  { %642 = dma.done.wait [#allocation4], 128  }
 0x41e   :  { %643 = vsyncadd [#allocation4], 4294967168 }
 0x41f   :  { %400 = vsyncpa [#allocation3], 1 }
 0x420   :  { %401 = vsyncpa [#allocation6], 1 }
 0x421   :  { %402 = vsyncpa [#allocation9], 1 }
 0x422   :  { %403 = vsyncpa [#allocation4], 1 }

</bundles_post_ra>
